<compile_context>
chip_gen: v5e
topology: v5e:2x2
jax: 0.10.0
libtpu: 0.0.40
codegen_flags: <defaults>
</compile_context>

<pallas_src>
import functools
import math

import jax
import jax.numpy as jnp
from jax import lax
from jax.experimental import pallas as pl
from jax.experimental.pallas import tpu as pltpu


def _log_sigmoid(x):
    # numerically stable: logsigmoid(x) = min(x, 0) - log1p(exp(-|x|))
    return jnp.minimum(x, 0.0) - jnp.log1p(jnp.exp(-jnp.abs(x)))


def _w2v_batch_kernel(c_idx_ref, k_idx_ref, n_idx_ref,   # flattened int32 indices (SMEM, scalar prefetch)
                      v_tbl_ref, u_tbl_ref,              # full padded tables, resident in VMEM
                      out_ref,                           # (1, 1, 1) per-batch partial sum
                      *, Wc, Wk, Wn, w_pos, w_neg):
    b = pl.program_id(0)
    Wu = Wk + Wn

    # ---- in-VMEM gather: dynamic size-1 sublane slices of the resident tables ----
    v_rows = [v_tbl_ref[pl.ds(c_idx_ref[b * Wc + c], 1), :] for c in range(Wc)]
    v_g = v_rows[0] if Wc == 1 else jnp.concatenate(v_rows, axis=0)        # (Wc, Dp)

    u_rows = [u_tbl_ref[pl.ds(k_idx_ref[b * Wk + j], 1), :] for j in range(Wk)]
    u_rows += [u_tbl_ref[pl.ds(n_idx_ref[b * Wn + j], 1), :] for j in range(Wn)]
    u_g = u_rows[0] if Wu == 1 else jnp.concatenate(u_rows, axis=0)        # (Wu, Dp)

    # ---- one small MXU matmul per batch: all pos + neg scores at once ----
    # TODO(synk): for large D / V, cast gathered rows to bf16 (keep f32 accumulation)
    # and keep the tables in HBM (pl.ANY) with coalesced DMA gathers instead of full
    # VMEM residency.
    scores = lax.dot_general(
        v_g, u_g,
        dimension_numbers=(((1,), (1,)), ((), ())),
        preferred_element_type=jnp.float32)                                # (Wc, Wu)

    # Closed-form column split: first Wk columns are context (+), rest negatives (-).
    col = lax.broadcasted_iota(jnp.int32, (Wc, Wu), 1)
    is_pos = col < Wk

    ls = _log_sigmoid(jnp.where(is_pos, scores, -scores))                  # one EUP pass
    pos_sum = jnp.sum(jnp.where(is_pos, ls, 0.0))
    neg_sum = jnp.sum(jnp.where(is_pos, 0.0, ls))
    partial = w_pos * pos_sum + w_neg * neg_sum                            # scalar weights

    out_ref[...] = jnp.reshape(partial, (1, 1, 1))


def embedding_loss(embed_v, embed_u, center_word, context_word, negative_word):
    """Forward pass of the PyTorch `Embedding` module (skip-gram NEG loss)."""
    B, Wc = center_word.shape
    Wk = context_word.shape[1]
    Wn = negative_word.shape[1]
    V, D = embed_v.shape

    # broadcast(pos_score, neg_score) element count & per-term multiplicities for -mean
    score_shape = jnp.broadcast_shapes((B, Wc, Wk), (B, Wc, Wn))
    count = math.prod(score_shape)
    w_pos = count // (B * Wc * Wk)
    w_neg = count // (B * Wc * Wn)
    inv_count = 1.0 / float(count)

    # Pad tables to (mult-of-8 rows, mult-of-128 lanes): lane-dense gathered rows and
    # (8,128)-aligned full-array VMEM blocks.  Zero padding does not change the dots.
    Vp = ((V + 7) // 8) * 8
    Dp = ((D + 127) // 128) * 128
    if (Vp, Dp) != (V, D):
        pad = ((0, Vp - V), (0, Dp - D))
        embed_v = jnp.pad(embed_v, pad)
        embed_u = jnp.pad(embed_u, pad)

    kernel = functools.partial(
        _w2v_batch_kernel,
        Wc=Wc, Wk=Wk, Wn=Wn,
        w_pos=float(w_pos), w_neg=float(w_neg))

    partials = pl.pallas_call(
        kernel,
        out_shape=jax.ShapeDtypeStruct((B, 1, 1), jnp.float32),
        grid_spec=pltpu.PrefetchScalarGridSpec(
            num_scalar_prefetch=3,                 # center / context / negative indices -> SMEM
            grid=(B,),                             # one batch element per grid step
            in_specs=[
                # Whole (padded) tables: one bulk DMA into VMEM, resident across steps.
                pl.BlockSpec((Vp, Dp), lambda b, *_: (0, 0)),
                pl.BlockSpec((Vp, Dp), lambda b, *_: (0, 0)),
            ],
            out_specs=pl.BlockSpec((1, 1, 1), lambda b, *_: (b, 0, 0)),
        ),
        compiler_params=pltpu.CompilerParams(
            dimension_semantics=("parallel",),     # shards batch across v7x's 2 TCs
        ),
    )(center_word.astype(jnp.int32).reshape(-1),   # 1D indices: no 2D SMEM padding
      context_word.astype(jnp.int32).reshape(-1),
      negative_word.astype(jnp.int32).reshape(-1),
      embed_v, embed_u)

    return -jnp.sum(partials) * inv_count


def _reference_loss(embed_v, embed_u, center_word, context_word, negative_word):
    v = embed_v[center_word]
    u = embed_u[context_word]
    neg = -embed_u[negative_word]
    pos_score = jax.nn.log_sigmoid(jnp.einsum("bcd,bkd->bck", v, u))
    neg_score = jax.nn.log_sigmoid(jnp.einsum("bcd,bkd->bck", v, neg))
    return -jnp.mean(pos_score + neg_score)


if __name__ == "__main__":
    num_embeddings, embedding_dim = 50, 32
    B, Wc, Wk, Wn = 2, 1, 4, 4

    key = jax.random.PRNGKey(0)
    k_v, k_u, k_c, k_k, k_n = jax.random.split(key, 5)

    # deterministic parameter init (see NOTE above re: original zeroing init)
    embed_v = jax.random.normal(k_v, (num_embeddings, embedding_dim), dtype=jnp.float32)
    embed_u = jax.random.normal(k_u, (num_embeddings, embedding_dim), dtype=jnp.float32)

    center_word = jax.random.randint(k_c, (B, Wc), 0, num_embeddings, dtype=jnp.int32)
    context_word = jax.random.randint(k_k, (B, Wk), 0, num_embeddings, dtype=jnp.int32)
    negative_word = jax.random.randint(k_n, (B, Wn), 0, num_embeddings, dtype=jnp.int32)

    loss = embedding_loss(embed_v, embed_u, center_word, context_word, negative_word)
    loss = jax.block_until_ready(loss)

    ref = _reference_loss(embed_v, embed_u, center_word, context_word, negative_word)
    assert jnp.allclose(loss, ref, rtol=1e-5, atol=1e-5), (loss, ref)

    print("KERNEL_OK")
</pallas_src>

<mosaic_0001>
module attributes {stable_mosaic.version = 11 : i64} {
  func.func @_w2v_batch_kernel(%arg0: i32, %arg1: memref<2xi32, #tpu.memory_space<smem>>, %arg2: memref<8xi32, #tpu.memory_space<smem>>, %arg3: memref<8xi32, #tpu.memory_space<smem>>, %arg4: memref<56x128xf32, #tpu.memory_space<vmem>>, %arg5: memref<56x128xf32, #tpu.memory_space<vmem>>, %arg6: memref<1x1x1xf32, #tpu.memory_space<vmem>>) attributes {dimension_semantics = [#tpu.dimension_semantics<parallel>], iteration_bounds = array<i64: 2>, scalar_prefetch = 3 : i64, scratch_operands = 0 : i64, tpu.core_type = #tpu.core_type<tc>, window_params = [{pipeline_mode = #tpu.pipeline_mode<synchronous>, transform_indices = @transform_0, window_bounds = array<i64: 56, 128>}, {pipeline_mode = #tpu.pipeline_mode<synchronous>, transform_indices = @transform_1, window_bounds = array<i64: 56, 128>}, {transform_indices = @transform_2, window_bounds = array<i64: 1, 1, 1>}]} {
    %c1_i32 = arith.constant 1 : i32
    %0 = arith.muli %arg0, %c1_i32 : i32
    %c0_i32 = arith.constant 0 : i32
    %1 = arith.addi %0, %c0_i32 : i32
    %2 = arith.index_cast %1 : i32 to index
    %3 = memref.load %arg1[%2] : memref<2xi32, #tpu.memory_space<smem>>
    %4 = arith.index_cast %3 : i32 to index
    %c0 = arith.constant 0 : index
    %5 = vector.load %arg4[%4, %c0] : memref<56x128xf32, #tpu.memory_space<vmem>>, vector<1x128xf32>
    %c4_i32 = arith.constant 4 : i32
    %6 = arith.muli %arg0, %c4_i32 : i32
    %c0_i32_0 = arith.constant 0 : i32
    %7 = arith.addi %6, %c0_i32_0 : i32
    %8 = arith.index_cast %7 : i32 to index
    %9 = memref.load %arg2[%8] : memref<8xi32, #tpu.memory_space<smem>>
    %10 = arith.index_cast %9 : i32 to index
    %c0_1 = arith.constant 0 : index
    %11 = vector.load %arg5[%10, %c0_1] : memref<56x128xf32, #tpu.memory_space<vmem>>, vector<1x128xf32>
    %c4_i32_2 = arith.constant 4 : i32
    %12 = arith.muli %arg0, %c4_i32_2 : i32
    %c1_i32_3 = arith.constant 1 : i32
    %13 = arith.addi %12, %c1_i32_3 : i32
    %14 = arith.index_cast %13 : i32 to index
    %15 = memref.load %arg2[%14] : memref<8xi32, #tpu.memory_space<smem>>
    %16 = arith.index_cast %15 : i32 to index
    %c0_4 = arith.constant 0 : index
    %17 = vector.load %arg5[%16, %c0_4] : memref<56x128xf32, #tpu.memory_space<vmem>>, vector<1x128xf32>
    %c4_i32_5 = arith.constant 4 : i32
    %18 = arith.muli %arg0, %c4_i32_5 : i32
    %c2_i32 = arith.constant 2 : i32
    %19 = arith.addi %18, %c2_i32 : i32
    %20 = arith.index_cast %19 : i32 to index
    %21 = memref.load %arg2[%20] : memref<8xi32, #tpu.memory_space<smem>>
    %22 = arith.index_cast %21 : i32 to index
    %c0_6 = arith.constant 0 : index
    %23 = vector.load %arg5[%22, %c0_6] : memref<56x128xf32, #tpu.memory_space<vmem>>, vector<1x128xf32>
    %c4_i32_7 = arith.constant 4 : i32
    %24 = arith.muli %arg0, %c4_i32_7 : i32
    %c3_i32 = arith.constant 3 : i32
    %25 = arith.addi %24, %c3_i32 : i32
    %26 = arith.index_cast %25 : i32 to index
    %27 = memref.load %arg2[%26] : memref<8xi32, #tpu.memory_space<smem>>
    %28 = arith.index_cast %27 : i32 to index
    %c0_8 = arith.constant 0 : index
    %29 = vector.load %arg5[%28, %c0_8] : memref<56x128xf32, #tpu.memory_space<vmem>>, vector<1x128xf32>
    %c4_i32_9 = arith.constant 4 : i32
    %30 = arith.muli %arg0, %c4_i32_9 : i32
    %c0_i32_10 = arith.constant 0 : i32
    %31 = arith.addi %30, %c0_i32_10 : i32
    %32 = arith.index_cast %31 : i32 to index
    %33 = memref.load %arg3[%32] : memref<8xi32, #tpu.memory_space<smem>>
    %34 = arith.index_cast %33 : i32 to index
    %c0_11 = arith.constant 0 : index
    %35 = vector.load %arg5[%34, %c0_11] : memref<56x128xf32, #tpu.memory_space<vmem>>, vector<1x128xf32>
    %c4_i32_12 = arith.constant 4 : i32
    %36 = arith.muli %arg0, %c4_i32_12 : i32
    %c1_i32_13 = arith.constant 1 : i32
    %37 = arith.addi %36, %c1_i32_13 : i32
    %38 = arith.index_cast %37 : i32 to index
    %39 = memref.load %arg3[%38] : memref<8xi32, #tpu.memory_space<smem>>
    %40 = arith.index_cast %39 : i32 to index
    %c0_14 = arith.constant 0 : index
    %41 = vector.load %arg5[%40, %c0_14] : memref<56x128xf32, #tpu.memory_space<vmem>>, vector<1x128xf32>
    %c4_i32_15 = arith.constant 4 : i32
    %42 = arith.muli %arg0, %c4_i32_15 : i32
    %c2_i32_16 = arith.constant 2 : i32
    %43 = arith.addi %42, %c2_i32_16 : i32
    %44 = arith.index_cast %43 : i32 to index
    %45 = memref.load %arg3[%44] : memref<8xi32, #tpu.memory_space<smem>>
    %46 = arith.index_cast %45 : i32 to index
    %c0_17 = arith.constant 0 : index
    %47 = vector.load %arg5[%46, %c0_17] : memref<56x128xf32, #tpu.memory_space<vmem>>, vector<1x128xf32>
    %c4_i32_18 = arith.constant 4 : i32
    %48 = arith.muli %arg0, %c4_i32_18 : i32
    %c3_i32_19 = arith.constant 3 : i32
    %49 = arith.addi %48, %c3_i32_19 : i32
    %50 = arith.index_cast %49 : i32 to index
    %51 = memref.load %arg3[%50] : memref<8xi32, #tpu.memory_space<smem>>
    %52 = arith.index_cast %51 : i32 to index
    %c0_20 = arith.constant 0 : index
    %53 = vector.load %arg5[%52, %c0_20] : memref<56x128xf32, #tpu.memory_space<vmem>>, vector<1x128xf32>
    %54 = tpu.concatenate %11, %17, %23, %29, %35, %41, %47, %53 in 0 : vector<1x128xf32>, vector<1x128xf32>, vector<1x128xf32>, vector<1x128xf32>, vector<1x128xf32>, vector<1x128xf32>, vector<1x128xf32>, vector<1x128xf32> -> vector<8x128xf32>
    %cst = arith.constant dense<0.000000e+00> : vector<1x8xf32>
    %55 = tpu.matmul %5, %54, %cst {dimension_numbers = #tpu.dot_dimension_numbers<[1], [1], [0], [0], [0, 0, 1, 0], [], []>} : vector<1x128xf32>, vector<8x128xf32>, vector<1x8xf32> -> vector<1x8xf32>
    %56 = tpu.iota {dimensions = array<i32: 1>} : vector<1x8xi32>
    %c4_i32_21 = arith.constant 4 : i32
    %57 = vector.broadcast %c4_i32_21 : i32 to vector<1x8xi32>
    %58 = arith.cmpi slt, %56, %57 : vector<1x8xi32>
    %cst_22 = arith.constant 0.000000e+00 : f32
    %59 = vector.broadcast %cst_22 : f32 to vector<1x8xf32>
    %60 = arith.subf %59, %55 : vector<1x8xf32>
    %61 = arith.select %58, %55, %60 : vector<1x8xi1>, vector<1x8xf32>
    %cst_23 = arith.constant 0.000000e+00 : f32
    %62 = vector.broadcast %cst_23 : f32 to vector<1x8xf32>
    %63 = arith.minimumf %61, %62 : vector<1x8xf32>
    %64 = math.absf %61 : vector<1x8xf32>
    %cst_24 = arith.constant 0.000000e+00 : f32
    %65 = vector.broadcast %cst_24 : f32 to vector<1x8xf32>
    %66 = arith.subf %65, %64 : vector<1x8xf32>
    %67 = math.exp %66 : vector<1x8xf32>
    %68 = math.log1p %67 : vector<1x8xf32>
    %69 = arith.subf %63, %68 : vector<1x8xf32>
    %cst_25 = arith.constant 0.000000e+00 : f32
    %70 = vector.broadcast %cst_25 : f32 to vector<1x8xf32>
    %71 = arith.select %58, %69, %70 : vector<1x8xi1>, vector<1x8xf32>
    %72 = vector.shape_cast %71 : vector<1x8xf32> to vector<1x1x8xf32>
    %cst_26 = arith.constant dense<0.000000e+00> : vector<1xf32>
    %73 = vector.multi_reduction <add>, %72, %cst_26 [1, 2] : vector<1x1x8xf32> to vector<1xf32>
    %74 = vector.shape_cast %73 : vector<1xf32> to vector<1x1x1xf32>
    %75 = vector.extract %74[0, 0, 0] : f32 from vector<1x1x1xf32>
    %cst_27 = arith.constant 0.000000e+00 : f32
    %76 = vector.broadcast %cst_27 : f32 to vector<1x8xf32>
    %77 = arith.select %58, %76, %69 : vector<1x8xi1>, vector<1x8xf32>
    %78 = vector.shape_cast %77 : vector<1x8xf32> to vector<1x1x8xf32>
    %cst_28 = arith.constant dense<0.000000e+00> : vector<1xf32>
    %79 = vector.multi_reduction <add>, %78, %cst_28 [1, 2] : vector<1x1x8xf32> to vector<1xf32>
    %80 = vector.shape_cast %79 : vector<1xf32> to vector<1x1x1xf32>
    %81 = vector.extract %80[0, 0, 0] : f32 from vector<1x1x1xf32>
    %cst_29 = arith.constant 1.000000e+00 : f32
    %82 = arith.mulf %cst_29, %75 : f32
    %cst_30 = arith.constant 1.000000e+00 : f32
    %83 = arith.mulf %cst_30, %81 : f32
    %84 = arith.addf %82, %83 : f32
    %85 = vector.broadcast %84 : f32 to vector<1x1x1xf32>
    %c0_31 = arith.constant 0 : index
    %c0_32 = arith.constant 0 : index
    %c0_33 = arith.constant 0 : index
    %86 = vector.load %arg6[%c0_31, %c0_32, %c0_33] : memref<1x1x1xf32, #tpu.memory_space<vmem>>, vector<1x1x1xf32>
    tpu.vector_store %arg6[%c0_31, %c0_32, %c0_33], %85 {strides = array<i32>} : memref<1x1x1xf32, #tpu.memory_space<vmem>>, vector<1x1x1xf32>,
    return
  }
  func.func @transform_0(%arg0: i32, %arg1: memref<2xi32, #tpu.memory_space<smem>>, %arg2: memref<8xi32, #tpu.memory_space<smem>>, %arg3: memref<8xi32, #tpu.memory_space<smem>>) -> (i32, i32) {
    %c0_i32 = arith.constant 0 : i32
    %c0_i32_0 = arith.constant 0 : i32
    %c0_i32_1 = arith.constant 0 : i32
    return %c0_i32, %c0_i32_0 : i32, i32
  }
  func.func @transform_1(%arg0: i32, %arg1: memref<2xi32, #tpu.memory_space<smem>>, %arg2: memref<8xi32, #tpu.memory_space<smem>>, %arg3: memref<8xi32, #tpu.memory_space<smem>>) -> (i32, i32) {
    %c0_i32 = arith.constant 0 : i32
    %c0_i32_0 = arith.constant 0 : i32
    %c0_i32_1 = arith.constant 0 : i32
    return %c0_i32, %c0_i32_0 : i32, i32
  }
  func.func @transform_2(%arg0: i32, %arg1: memref<2xi32, #tpu.memory_space<smem>>, %arg2: memref<8xi32, #tpu.memory_space<smem>>, %arg3: memref<8xi32, #tpu.memory_space<smem>>) -> (i32, i32, i32) {
    %c0_i32 = arith.constant 0 : i32
    %c0_i32_0 = arith.constant 0 : i32
    %c0_i32_1 = arith.constant 0 : i32
    return %arg0, %c0_i32, %c0_i32_0 : i32, i32, i32
  }
}

</mosaic_0001>

<bundles_post_ra>
// kernel: tpu_custom_call.1
= control target key start
LH: loop header
LB: loop body
LE: loop exit
PB: predicated region body
PF: predicated region fallthrough
CT: control target
= control target key end

     0   :  { %s541_s24 = smov [#allocation3]   ;;  %s542_s25 = smov [#allocation4]   ;;  %s642_s0 = inlined_call_operand.hbm [shape: s32[2], index: 0, kind: input, shape index: {}]   ;;  %s643_s3 = inlined_call_operand.hbm [shape: f32[56,128], index: 3, kind: input, shape index: {}]   ;;  %s644_s4 = inlined_call_operand.hbm [shape: f32[56,128], index: 4, kind: input, shape index: {}]   ;;  %s645_s5 = inlined_call_operand.vmem [shape: f32[2,1,1], index: 5, kind: output, shape index: {}]   ;;  %s646_s1 = inlined_call_operand.hbm [shape: s32[8], index: 1, kind: input, shape index: {}]   ;;  %s647_s2 = inlined_call_operand.vmem [shape: s32[8], index: 2, kind: input, shape index: {}]  }
   0x1   :  { %s11_s20 = sshll.u32 %s642_s0, 4  ;;  %s16_s23 = sshll.u32 %s646_s1, 4  ;;  %s12_s20 = int_to_ptr.hbm [resolvable:$true] %s11_s20  ;;  %s17_s23 = int_to_ptr.hbm [resolvable:$true] %s16_s23 }
   0x2   :  { %14 = dma.hbm_to_smem %s12_s20, 16, %s541_s24, [#allocation2] }
   0x3   :  { %19 = dma.hbm_to_smem %s17_s23, 16, %s542_s25, [#allocation2] }
   0x4   :  { %s21_s28 = sshll.u32 %s647_s2, 4  ;;  %s543_s29 = smov [#allocation5]   ;;  %s22_s28 = int_to_ptr.vmem [resolvable:$true] %s21_s28 }
   0x5   :  { %24 = dma.vmem_to_smem %s22_s28, 16, %s543_s29, [#allocation2] }
   0x6   :  { %527 = dma.done.wait [#allocation2], 48 }
   0x7   :  { %528 = vsyncadd [#allocation2], 4294967248 }
   0x8   :  { %27 = sfence }
   0x9   :  { %28 = vsyncpa [#allocation7], 0 }
   0xa   :  { %29 = vsyncpa [#allocation9], 0  ;;  %s587_s0 = smov 0  }
   0xb LB: > { %s119_s2 = sshll.u32 %s643_s3, 4  ;;  %s596_s6 = sadd.s32 4294967295, %s539_s0   ;;  %s539_s0 = sphi %s587_s0, %s35_s0   ;;  %s120_s2 = int_to_ptr.hbm [resolvable:$true] %s119_s2 }
   0xc   : > { %p376_p0 = scmp.ge.s32.totalorder %s539_s0, 1  ;;  %p108_p1 = scmp.lt.s32.totalorder %s539_s0, 3 }
   0xd   : > { %p404_p2 = scmp.eq.s32.totalorder %s596_s6, 0  ;;  %s544_s8 = smov [#allocation6]  }
   0xe   : > { %p601_p3 = pnand %p376_p0, %p108_p1  ;;  %s121_s9 = sshll.u32 %s544_s8, 4  ;;  %s122_s9 = int_to_ptr.vmem [resolvable:$true] %s121_s9 }
   0xf   : > { %s133_s12 = sshll.u32 %s644_s4, 4  ;;  %s545_s13 = smov [#allocation8]   ;;  %s134_s12 = int_to_ptr.hbm [resolvable:$true] %s133_s12 }
  0x10   : > { %p397_p4 = pneg %p601_p3  ;;  %s135_s14 = sshll.u32 %s545_s13, 4  ;;  %s136_s14 = int_to_ptr.vmem [resolvable:$true] %s135_s14 }
  0x11   : > { %s546_s15 = smov 128   ;;  %s547_s16 = smov 8  }
  0x12   : > { %p398_p5 = pnand %p404_p2, %p397_p4  ;;  %151 = sbr.rel (%p601_p3) target bundleno = 396 (0x18c), region = 28 }
  0x14   : > { %400 = dma.hbm_to_vmem [thread:$0]  (!%p398_p5), %s120_s2, 896, %s122_s9, [#allocation7], %s546_s15, %s546_s15, %s547_s16  }
  0x15   : > { %403 = dma.hbm_to_vmem [thread:$0]  (!%p398_p5), %s134_s12, 896, %s136_s14, [#allocation9], %s546_s15, %s546_s15, %s547_s16  }
  0x17   : > { %530 = dma.done.wait (%p404_p2), [#allocation7], 896  }
  0x18   : > { %532 = vsyncadd (%p404_p2), [#allocation7], 4294966400 }
  0x19   : > { %534 = dma.done.wait (%p404_p2), [#allocation9], 896  }
  0x1a   : > { %536 = vsyncadd (%p404_p2), [#allocation9], 4294966400  ;;  %s382_s17 = sshll.u32 %s596_s6, 2  ;;  %vm227_vm0 = vcmask 1040384   ;;  %s626_s30 = sld [smem:[#allocation3 + %s596_s6]]  ;;  %vm229_vm1 = vcmask 1041408   ;;  %v261_v23 = vlaneseq }
  0x1b   : > { %s179_s18 = sld [smem:[#allocation4 + %s382_s17]]  ;;  %s182_s19 = sadd.s32 1, %s382_s17  ;;  %vm231_vm2 = vcmask 1042432   ;;  %vm233_vm3 = vcmask 1043456   ;;  %vm235_vm4 = vcmask 1044480   ;;  %vm237_vm5 = vcmask 1045504  }
  0x1c   : > { %s183_s20 = sld [smem:[#allocation4 + %s182_s19]]  ;;  %s186_s21 = sadd.s32 2, %s382_s17  ;;  %vm239_vm6 = vcmask 1046528   ;;  %v262_v24 = vand.u32 127, %v261_v23  ;;  %vm282_vm9 = vcmask 57344   ;;  %vm306_vm10 = vcmask 0  }
  0x1d   : > { %s187_s22 = sld [smem:[#allocation4 + %s186_s21]]  ;;  %s190_s23 = sadd.s32 3, %s382_s17 }
  0x1e   : > { %s191_s24 = sld [smem:[#allocation4 + %s190_s23]]  ;;  %vm263_vm7 = vcmp.lt.s32.totalorder %v262_v24, 4  ;;  %p172_p6 = scmp.lt.s32.totalorder %s596_s6, 1 }
  0x1f   : > { %s194_s25 = sld [smem:[#allocation5 + %s382_s17]] }
  0x20   : > { %s197_s26 = sld [smem:[#allocation5 + %s182_s19]]  ;;  %s176_s12 = scalar_lea.vmem [#allocation6], %s626_s30 }
  0x21   : > { %s200_s27 = sld [smem:[#allocation5 + %s186_s21]]  ;;  %s180_s29 = scalar_lea.vmem [#allocation8], %s179_s18  ;;  %v177_v22 = vld [vmem:[%s176_s12] sm:$0x1] }
  0x22   : > { %s623_s28 = sld [smem:[#allocation5 + %s190_s23]]  ;;  %v181_v0 = vld [vmem:[%s180_s29] sm:$0x1]  ;;  %s184_s1 = scalar_lea.vmem [#allocation8], %s183_s20 }
  0x23   : > { %v185_v1 = vld [vmem:[%s184_s1] sm:$0x1]  ;;  %s188_s2 = scalar_lea.vmem [#allocation8], %s187_s22  ;;  %s650_s6 = smov (!%p172_p6, %s596_s6), 1 }
  0x24   : > { %v189_v2 = vld [vmem:[%s188_s2] sm:$0x1]  ;;  %v207_v3 = vrot.slane %v185_v1, 7  ;;  %s192_s7 = scalar_lea.vmem [#allocation8], %s191_s24  ;;  %s174_s17 = scalar_lea.vmem %s645_s5, %s650_s6 }
  0x25   : > { %v193_v4 = vld [vmem:[%s192_s7] sm:$0x1]  ;;  %v210_v5 = vrot.slane %v189_v2, 6  ;;  %s195_s8 = scalar_lea.vmem [#allocation8], %s194_s25 }
  0x26   : > { %v196_v6 = vld [vmem:[%s195_s8] sm:$0x1]  ;;  %v213_v7 = vrot.slane %v193_v4, 5  ;;  %v228_v8 = vsel %vm227_vm0, %v181_v0, %v207_v3  ;;  %s198_s9 = scalar_lea.vmem [#allocation8], %s197_s26 }
  0x27   : > { %v199_v9 = vld [vmem:[%s198_s9] sm:$0x1]  ;;  %v216_v10 = vrot.slane %v196_v6, 4  ;;  %v230_v11 = vsel %vm229_vm1, %v228_v8, %v210_v5  ;;  %s201_s10 = scalar_lea.vmem [#allocation8], %s200_s27 }
  0x28   : > { %v202_v12 = vld [vmem:[%s201_s10] sm:$0x1]  ;;  %v219_v13 = vrot.slane %v199_v9, 3  ;;  %v232_v14 = vsel %vm231_vm2, %v230_v11, %v213_v7  ;;  %s204_s11 = scalar_lea.vmem [#allocation8], %s623_s28 }
  0x29   : > { %v205_v15 = vld [vmem:[%s204_s11] sm:$0x1]  ;;  %v222_v16 = vrot.slane %v202_v12, 2  ;;  %v234_v17 = vsel %vm233_vm3, %v232_v14, %v216_v10 }
  0x2a   : > { %v225_v18 = vrot.slane %v205_v15, 1  ;;  %v236_v19 = vsel %vm235_vm4, %v234_v17, %v219_v13 }
  0x2b   : > { %v238_v20 = vsel %vm237_vm5, %v236_v19, %v222_v16 }
  0x2c   : > { %v240_v21 = vsel %vm239_vm6, %v238_v20, %v225_v18 }
  0x2d   : > { %256 = vmatpush.xpose.msra.mxu0 %v240_v21 }
  0x30   : > { %257 = vmatmul.f32.vlgmr.msra.gmra.mxu0 %v177_v22 }
  0xad   : > { %v258_v25 = vpop.f32.mrf.mxu0 }
  0xae   : > { %v264_v26 = vsub.f32 0.0, %v258_v25 }
  0xb0   : > { %v265_v27 = vsel %vm263_vm7, %v258_v25, %v264_v26 }
  0xb1   : > { %v267_v28 = vand.u32 2147483647, %v265_v27  ;;  %v266_v39 = vmin.f32 %v265_v27, 0.0 }
  0xb3   : > { %v268_v29 = vsub.f32 0.0, %v267_v28 }
  0xb5   : > { %v269_v30 = vmul.f32 1.442695, %v268_v29 }
  0xb7   : > { %423 = vpow2.f32 %v269_v30 }
  0xbd   : > { %v424_v31 = vpop.eup %423 }
  0xbe   : > { %v271_v32 = vadd.f32 1.0, %v424_v31  ;;  %v274_v33 = vmul.f32 -0.5, %v424_v31  ;;  %v277_v35 = vand.u32 2147483647, %v424_v31 }
  0xc0   : > { %425 = vlog2.f32 %v271_v32  ;;  %v275_v34 = vadd.f32 1.0, %v274_v33  ;;  %vm278_vm8 = vcmp.lt.f32.partialorder %v277_v35, 0.0004427343 }
  0xc2   : > { %v276_v38 = vmul.f32 %v424_v31, %v275_v34 }
  0xc6   : > { %v426_v36 = vpop.eup %425 }
  0xc7   : > { %v273_v37 = vmul.f32 0.6931472, %v426_v36 }
  0xc9   : > { %v279_v40 = vsel %vm278_vm8, %v276_v38, %v273_v37 }
  0xca   : > { %v280_v41 = vsub.f32 %v266_v39, %v279_v40 }
  0xcc   : > { %v281_v42 = vsel %vm263_vm7, %v280_v41, 0.0  ;;  %v293_v44 = vsel %vm263_vm7, 0.0, %v280_v41 }
  0xcd   : > { %v283_v43 = vsel %vm282_vm9, %v281_v42, 0.0  ;;  %v294_v45 = vsel %vm282_vm9, %v293_v44, 0.0 }
  0xce   : > { %284 = vadd.xlane.f32.xlu0 %v283_v43 }
  0xd6   : > { %295 = vadd.xlane.f32.xlu0 %v294_v45 }
 0x141   : > { %v285_v46 = vpop.xlane.xlu0 %284 }
 0x142   : > { %v286_v47 = vrot.slane %v285_v46, 4 }
 0x144   : > { %v287_v48 = vadd.f32 %v286_v47, %v285_v46 }
 0x146   : > { %v288_v49 = vrot.slane %v287_v48, 2 }
 0x148   : > { %v289_v50 = vadd.f32 %v288_v49, %v287_v48 }
 0x149   : > { %v296_v51 = vpop.xlane.xlu0 %295 }
 0x14a   : > { %v297_v52 = vrot.slane %v296_v51, 4  ;;  %v290_v53 = vrot.slane %v289_v50, 1 }
 0x14c   : > { %v298_v54 = vadd.f32 %v297_v52, %v296_v51  ;;  %v291_v55 = vadd.f32 %v290_v53, %v289_v50 }
 0x14e   : > { %v299_v56 = vrot.slane %v298_v54, 2  ;;  %385 = vpush %v291_v55 }
 0x150   : > { %v300_v57 = vadd.f32 %v299_v56, %v298_v54 }
 0x152   : > { %v301_v58 = vrot.slane %v300_v57, 1 }
 0x154   : > { %v302_v59 = vadd.f32 %v301_v58, %v300_v57 }
 0x156   : > { %387 = vpush %v302_v59 }
 0x17f   : > { %s386_s13 = spop %385 }
 0x187   : > { %s388_s14 = spop %387 }
 0x188   : > { %s304_s18 = sadd.f32 %s388_s14, %s386_s13 }
 0x18a   : > { %v305_v60 = vstv %s304_s18 }
 0x18b   : > { %307 = vst.msk [vmem:[%s174_s17] sm:$0x1] %vm306_vm10, %v305_v60 }
 0x18c PF: > { %s35_s0 = sadd.s32 1, %s539_s0  }
 0x18d   : > { %p32_p7 = scmp.ge.s32.totalorder %s35_s0, 4  }
 0x18f   :  { %34 = sbr.rel (!%p32_p7) target bundleno = 11 (0xb), region = 73 }
 0x194   :  { %325 = vsyncpa [#allocation7], 1 }
 0x195   :  { %327 = vsyncpa [#allocation7 + $0x1], 1 }
 0x196   :  { %328 = vsyncpa [#allocation9], 1 }

</bundles_post_ra>
